<compile_context>
chip_gen: v5e
topology: v5e:2x2
jax: 0.10.0
libtpu: 0.0.40
codegen_flags: <defaults>
</compile_context>

<pallas_src>
import math

import jax
import jax.numpy as jnp
from jax.experimental import pallas as pl
from jax.experimental.pallas import tpu as pltpu


def _cdiv(a, b):
    return -(-a // b)


def loss_mae(truth, pred, *, target_block_bytes=4 << 20,
             vmem_limit_bytes=48 << 20):
    """truth, pred: (B, C, *spatial) arrays. Returns scalar f32 MAE loss."""
    assert truth.shape == pred.shape, (truth.shape, pred.shape)
    assert truth.ndim >= 3
    B, C = truth.shape[0], truth.shape[1]
    R = B * C                                   # rows (mean over these)
    L = math.prod(truth.shape[2:])              # lanes (summed per row)

    t2 = truth.reshape(R, L)                    # contiguous reshape: free
    p2 = pred.reshape(R, L)
    itemsize = jnp.dtype(truth.dtype).itemsize

    # ---- row tile: small, so the lane (fast-axis) tile can be large --------
    ROW_CAP = 64
    if R <= ROW_CAP:
        tr, nr = R, 1                           # full dim -> always legal
    else:
        tr, nr = ROW_CAP, _cdiv(R, ROW_CAP)     # multiple of 8
    row_mask_needed = (R % tr) != 0

    # ---- lane tile: big multiple of 128, sized from the block byte budget --
    cap_tl = max(128, ((target_block_bytes // max(1, tr * itemsize)) // 128) * 128)
    tl = L if L <= cap_tl else cap_tl           # tl == L (full dim) is legal
    n_lane_blocks = _cdiv(L, tl)
    lane_partial = (L % tl) != 0                # only possible when L > cap_tl

    # ---- split the lane sweep into parallel groups so the 'parallel' grid --
    # ---- extent is >= 2 (both v7x TensorCores) even when nr == 1 -----------
    G = 2 if (nr == 1 and n_lane_blocks >= 2) else 1
    nl_inner = _cdiv(n_lane_blocks, G)
    has_dup = (G * nl_inner) != n_lane_blocks   # at most G-1 fully-masked dups
    lane_mask_needed = lane_partial or has_dup
    last_lane_block = n_lane_blocks - 1

    def in_map(g, i, j):
        blk = g * nl_inner + j
        if has_dup:
            # duplicate steps re-read the last real block; the in-kernel lane
            # mask (global lane index >= L) zeroes their contribution.
            blk = jnp.minimum(blk, last_lane_block)
        return (i, blk)

    def kernel(t_ref, p_ref, o_ref):
        g = pl.program_id(0)
        i = pl.program_id(1)
        j = pl.program_id(2)

        # Pure VPU elementwise work; sub/abs in the input dtype, f32 accumulate.
        d = jnp.abs(t_ref[...] - p_ref[...]).astype(jnp.float32)

        if lane_mask_needed or row_mask_needed:
            keep = None
            if lane_mask_needed:
                lane_ids = jax.lax.broadcasted_iota(jnp.int32, (tr, tl), 1)
                lane_start = (g * nl_inner + j) * tl
                keep = (lane_start + lane_ids) < L
            if row_mask_needed:
                row_ids = jax.lax.broadcasted_iota(jnp.int32, (tr, tl), 0)
                rmask = (i * tr + row_ids) < R
                keep = rmask if keep is None else jnp.logical_and(keep, rmask)
            d = jnp.where(keep, d, 0.0)

        # Per-row partial sum of this block (vreg adds + one lane reduce).
        s = jnp.sum(d, axis=-1, keepdims=True)          # (tr, 1) f32

        # The output block is resident across the inner ("arbitrary") lane
        # sweep -> use it directly as the accumulator; first step writes.
        @pl.when(j == 0)
        def _():
            o_ref[...] = s

        @pl.when(j > 0)
        def _():
            o_ref[...] += s

    n_elems = R * L
    cost = pl.CostEstimate(
        flops=3 * n_elems,                      # sub + abs + add
        transcendentals=0,
        bytes_accessed=2 * n_elems * itemsize + G * nr * tr * 4,
    )

    partial = pl.pallas_call(
        kernel,
        out_shape=jax.ShapeDtypeStruct((G, nr, tr, 1), jnp.float32),
        grid_spec=pltpu.PrefetchScalarGridSpec(
            num_scalar_prefetch=0,
            grid=(G, nr, nl_inner),
            in_specs=[
                pl.BlockSpec((tr, tl), in_map),
                pl.BlockSpec((tr, tl), in_map),
            ],
            # leading dims squeezed -> kernel sees a (tr, 1) accumulator block
            out_specs=pl.BlockSpec((None, None, tr, 1),
                                   lambda g, i, j: (g, i, 0, 0)),
        ),
        compiler_params=pltpu.CompilerParams(
            dimension_semantics=("parallel", "parallel", "arbitrary"),
            vmem_limit_bytes=vmem_limit_bytes,
        ),
        cost_estimate=cost,
    )(t2, p2)

    # mean over the leading (B, C) dims == total sum / (B * C)
    return jnp.sum(partial) * jnp.float32(1.0 / R)


def loss_mae_ref(truth, pred):
    differ = truth - pred
    mae = jnp.sum(jnp.abs(differ), axis=(2, 3, 4))
    return jnp.mean(mae)


if __name__ == "__main__":
    key = jax.random.PRNGKey(0)
    k1, k2 = jax.random.split(key)
    # Small 5D shapes consistent with sum over dims (2, 3, 4).
    shape = (2, 4, 4, 8, 16)  # (B, C, D, H, W)
    truth = jax.random.normal(k1, shape, dtype=jnp.float32)
    pred = jax.random.normal(k2, shape, dtype=jnp.float32)

    out = loss_mae(truth, pred)
    out = jax.block_until_ready(out)

    ref = loss_mae_ref(truth, pred)
    assert jnp.allclose(out, ref, rtol=1e-5, atol=1e-4), (out, ref)
    print("KERNEL_OK")
</pallas_src>

<mosaic_0001>
module attributes {stable_mosaic.version = 11 : i64} {
  func.func @kernel(%arg0: i32, %arg1: i32, %arg2: i32, %arg3: memref<8x512xf32, #tpu.memory_space<vmem>>, %arg4: memref<8x512xf32, #tpu.memory_space<vmem>>, %arg5: memref<1x1x8x1xf32, #tpu.memory_space<vmem>>) attributes {dimension_semantics = [#tpu.dimension_semantics<parallel>, #tpu.dimension_semantics<parallel>, #tpu.dimension_semantics<arbitrary>], iteration_bounds = array<i64: 1, 1, 1>, scalar_prefetch = 0 : i64, scratch_operands = 0 : i64, tpu.core_type = #tpu.core_type<tc>, window_params = [{transform_indices = @transform_0, window_bounds = array<i64: 8, 512>}, {transform_indices = @transform_1, window_bounds = array<i64: 8, 512>}, {transform_indices = @transform_2, window_bounds = array<i64: 1, 1, 8, 1>}]} {
    %c0 = arith.constant 0 : index
    %c0_0 = arith.constant 0 : index
    %0 = vector.load %arg3[%c0, %c0_0] : memref<8x512xf32, #tpu.memory_space<vmem>>, vector<8x512xf32>
    %c0_1 = arith.constant 0 : index
    %c0_2 = arith.constant 0 : index
    %1 = vector.load %arg4[%c0_1, %c0_2] : memref<8x512xf32, #tpu.memory_space<vmem>>, vector<8x512xf32>
    %2 = arith.subf %0, %1 : vector<8x512xf32>
    %3 = math.absf %2 : vector<8x512xf32>
    %cst = arith.constant dense<0.000000e+00> : vector<8xf32>
    %4 = vector.multi_reduction <add>, %3, %cst [1] : vector<8x512xf32> to vector<8xf32>
    %5 = vector.shape_cast %4 : vector<8xf32> to vector<8x1xf32>
    %c0_i32 = arith.constant 0 : i32
    %6 = arith.cmpi eq, %arg2, %c0_i32 : i32
    %7 = arith.extui %6 : i1 to i32
    %c0_i32_3 = arith.constant 0 : i32
    %8 = arith.cmpi ne, %7, %c0_i32_3 : i32
    scf.if %8 {
      %c0_6 = arith.constant 0 : index
      %c0_7 = arith.constant 0 : index
      %c0_8 = arith.constant 0 : index
      %c0_9 = arith.constant 0 : index
      %12 = vector.load %arg5[%c0_6, %c0_7, %c0_8, %c0_9] : memref<1x1x8x1xf32, #tpu.memory_space<vmem>>, vector<1x1x8x1xf32>
      %13 = vector.shape_cast %12 : vector<1x1x8x1xf32> to vector<8x1xf32>
      %14 = vector.shape_cast %5 : vector<8x1xf32> to vector<1x1x8x1xf32>
      tpu.vector_store %arg5[%c0_6, %c0_7, %c0_8, %c0_9], %14 {strides = array<i32>} : memref<1x1x8x1xf32, #tpu.memory_space<vmem>>, vector<1x1x8x1xf32>,
    } else {
    }
    %c0_i32_4 = arith.constant 0 : i32
    %9 = arith.cmpi sgt, %arg2, %c0_i32_4 : i32
    %10 = arith.extui %9 : i1 to i32
    %c0_i32_5 = arith.constant 0 : i32
    %11 = arith.cmpi ne, %10, %c0_i32_5 : i32
    scf.if %11 {
      %c0_6 = arith.constant 0 : index
      %c0_7 = arith.constant 0 : index
      %c0_8 = arith.constant 0 : index
      %c0_9 = arith.constant 0 : index
      %12 = vector.load %arg5[%c0_6, %c0_7, %c0_8, %c0_9] : memref<1x1x8x1xf32, #tpu.memory_space<vmem>>, vector<1x1x8x1xf32>
      %13 = vector.shape_cast %12 : vector<1x1x8x1xf32> to vector<8x1xf32>
      %14 = arith.addf %13, %5 : vector<8x1xf32>
      %c0_10 = arith.constant 0 : index
      %c0_11 = arith.constant 0 : index
      %c0_12 = arith.constant 0 : index
      %c0_13 = arith.constant 0 : index
      %15 = vector.load %arg5[%c0_10, %c0_11, %c0_12, %c0_13] : memref<1x1x8x1xf32, #tpu.memory_space<vmem>>, vector<1x1x8x1xf32>
      %16 = vector.shape_cast %15 : vector<1x1x8x1xf32> to vector<8x1xf32>
      %17 = vector.shape_cast %14 : vector<8x1xf32> to vector<1x1x8x1xf32>
      tpu.vector_store %arg5[%c0_10, %c0_11, %c0_12, %c0_13], %17 {strides = array<i32>} : memref<1x1x8x1xf32, #tpu.memory_space<vmem>>, vector<1x1x8x1xf32>,
    } else {
    }
    return
  }
  func.func @transform_0(%arg0: i32, %arg1: i32, %arg2: i32) -> (i32, i32) {
    %c1_i32 = arith.constant 1 : i32
    %0 = arith.muli %arg0, %c1_i32 : i32
    %1 = arith.addi %0, %arg2 : i32
    %c0_i32 = arith.constant 0 : i32
    return %arg1, %1 : i32, i32
  }
  func.func @transform_1(%arg0: i32, %arg1: i32, %arg2: i32) -> (i32, i32) {
    %c1_i32 = arith.constant 1 : i32
    %0 = arith.muli %arg0, %c1_i32 : i32
    %1 = arith.addi %0, %arg2 : i32
    %c0_i32 = arith.constant 0 : i32
    return %arg1, %1 : i32, i32
  }
  func.func @transform_2(%arg0: i32, %arg1: i32, %arg2: i32) -> (i32, i32, i32, i32) {
    %c0_i32 = arith.constant 0 : i32
    %c0_i32_0 = arith.constant 0 : i32
    %c0_i32_1 = arith.constant 0 : i32
    return %arg0, %arg1, %c0_i32, %c0_i32_0 : i32, i32, i32, i32
  }
}

</mosaic_0001>

<bundles_post_ra>
// kernel: tpu_custom_call.1
= control target key start
LH: loop header
LB: loop body
LE: loop exit
PB: predicated region body
PF: predicated region fallthrough
CT: control target
= control target key end

     0   :  { %7 = vsyncpa [#allocation3], 0  ;;  %s172_s0 = inlined_call_operand.hbm [shape: f32[8,512], index: 0, kind: input, shape index: {}]   ;;  %s173_s1 = inlined_call_operand.hbm [shape: f32[8,512], index: 1, kind: input, shape index: {}]   ;;  %s174_s2 = inlined_call_operand.vmem [shape: f32[1,1,8,1], index: 2, kind: output, shape index: {}]  }
   0x1   :  { %s18_s11 = sshll.u32 %s172_s0, 4  ;;  %s19_s11 = int_to_ptr.hbm [resolvable:$true] %s18_s11 }
   0x2   :  { %8 = vsyncpa [#allocation5], 0  ;;  %s146_s12 = smov [#allocation2]   ;;  %s33_s16 = sshll.u32 %s173_s1, 4  ;;  %s34_s16 = int_to_ptr.hbm [resolvable:$true] %s33_s16 }
   0x3   :  { %s20_s13 = sshll.u32 %s146_s12, 4  ;;  %s147_s17 = smov [#allocation4]   ;;  %s21_s13 = int_to_ptr.vmem [resolvable:$true] %s20_s13 }
   0x4   :  { %23 = dma.hbm_to_vmem [thread:$0]  %s19_s11, 512, %s21_s13, [#allocation3]  }
   0x5   :  { %s35_s18 = sshll.u32 %s147_s17, 4  ;;  %s36_s18 = int_to_ptr.vmem [resolvable:$true] %s35_s18 }
   0x6   :  { %38 = dma.hbm_to_vmem [thread:$0]  %s34_s16, 512, %s36_s18, [#allocation5]  }
   0x7   :  { %142 = dma.done.wait [#allocation3], 512  }
   0x8   :  { %143 = vsyncadd [#allocation3], 4294966784 }
   0x9   :  { %144 = dma.done.wait [#allocation5], 512  }
   0xa   :  { %145 = vsyncadd [#allocation5], 4294966784  ;;  %v51_v0 = vld [vmem:[#allocation2] sm:$0xff]  ;;  %v52_v1 = vld [vmem:[#allocation2 + $0x8] sm:$0xff]  ;;  %vm76_vm0 = vcmask 7168  }
   0xb   :  { %v53_v2 = vld [vmem:[#allocation2 + $0x10] sm:$0xff]  ;;  %v54_v3 = vld [vmem:[#allocation2 + $0x18] sm:$0xff]  ;;  %v55_v4 = vld [vmem:[#allocation4] sm:$0xff] }
   0xc   :  { %v56_v5 = vld [vmem:[#allocation4 + $0x8] sm:$0xff]  ;;  %v57_v6 = vld [vmem:[#allocation4 + $0x10] sm:$0xff]  ;;  %v58_v7 = vld [vmem:[#allocation4 + $0x18] sm:$0xff]  ;;  %v59_v8 = vsub.f32 %v51_v0, %v55_v4 }
   0xd   :  { %v60_v9 = vsub.f32 %v52_v1, %v56_v5  ;;  %v61_v10 = vsub.f32 %v53_v2, %v57_v6  ;;  %v62_v11 = vsub.f32 %v54_v3, %v58_v7 }
   0xe   :  { %v63_v12 = vand.u32 2147483647, %v59_v8 }
   0xf   :  { %v64_v13 = vand.u32 2147483647, %v60_v9  ;;  %v65_v14 = vand.u32 2147483647, %v61_v10  ;;  %v66_v15 = vand.u32 2147483647, %v62_v11 }
  0x11   :  { %v67_v16 = vadd.f32 %v64_v13, %v63_v12 }
  0x13   :  { %v68_v17 = vadd.f32 %v67_v16, %v65_v14 }
  0x15   :  { %v69_v18 = vadd.f32 %v68_v17, %v66_v15 }
  0x17   :  { %70 = vadd.xlane.f32.xlu0 %v69_v18 }
  0x8a   :  { %v71_v19 = vpop.xlane.xlu0 %70 }
  0x8b   :  { %77 = vst.msk [vmem:[%s174_s2] sm:$0xff] %vm76_vm0, %v71_v19 }
  0x8c   :  { %90 = vsyncpa [#allocation3], 1 }
  0x8d   :  { %91 = vsyncpa [#allocation5], 1 }

</bundles_post_ra>
